<compile_context>
chip_gen: v6e
topology: v6e:2x2x1
jax: 0.10.0
libtpu: 0.0.40
codegen_flags: <defaults>
</compile_context>

<pallas_src>
import jax
import jax.numpy as jnp
from jax.experimental import pallas as pl
from jax.experimental.pallas import tpu as pltpu

_LANE = 128
_TARGET_BLOCK_BYTES = 2 << 20   # ~2 MiB/block; x2 buffers x (in+out) = ~8 MiB VMEM


def _copy_kernel(x_ref, o_ref):
    # One lane-dense tile; full-width unmasked stores on the main path
    # (lane dim is a multiple of 128 there).
    o_ref[...] = x_ref[...]


def _sublane_unit(dtype):
    # Sublane divisibility scales with packing: 8 (f32/i32), 16 (bf16), 32 (i8/fp8).
    return max(8, 32 // jnp.dtype(dtype).itemsize)


def _pallas_copy_2d(x2d):
    """Materialize an (R, L) array with a single tiled Pallas HBM copy."""
    R, L = x2d.shape
    itemsize = jnp.dtype(x2d.dtype).itemsize
    sub = _sublane_unit(x2d.dtype)

    # Rows per block targeting ~_TARGET_BLOCK_BYTES, multiple of the sublane unit.
    max_rows = max(sub, (_TARGET_BLOCK_BYTES // max(1, L * itemsize)) // sub * sub)
    if R <= max_rows:
        if R >= 2 * sub:
            # Split into 2 blocks so a megacore (v7x) can shard the copy.
            br = ((R + 2 * sub - 1) // (2 * sub)) * sub
        else:
            br = R                      # single block == full extent (always legal)
    else:
        br = max_rows                   # multiple of `sub`; partial tail is masked
    grid = (pl.cdiv(R, br),)

    return pl.pallas_call(
        _copy_kernel,
        out_shape=jax.ShapeDtypeStruct((R, L), x2d.dtype),
        grid=grid,
        in_specs=[pl.BlockSpec((br, L), lambda i: (i, 0))],
        out_specs=pl.BlockSpec((br, L), lambda i: (i, 0)),
        # Write the result in place of the (otherwise dead) input buffer.
        input_output_aliases={0: 0},
        # Advertise pure memory traffic so XLA can overlap with neighbors.
        cost_estimate=pl.CostEstimate(
            flops=0, transcendentals=0, bytes_accessed=2 * R * L * itemsize),
        compiler_params=pltpu.CompilerParams(
            dimension_semantics=("parallel",)),
    )(x2d)


def flatten(x):
    """Pallas equivalent of torch.flatten(x, 1): (N, d1, ..., dk) -> (N, K)."""
    N = x.shape[0]
    K = 1
    for d in x.shape[1:]:
        K *= d
    T = N * K

    # torch.flatten(x, 1) is a metadata-only view on a contiguous tensor;
    # this row-major rank collapse is that view (zero copy).
    x_flat = jnp.reshape(x, (N, K))

    # Materialize with exactly one lane-dense Pallas copy.  The flat buffer is
    # repacked (metadata only) into (T//L, L) with L a multiple of 128, so the
    # tiling is independent of N/K and every store is unmasked.
    for L in (1024, 512, 256, _LANE):
        if T % L == 0:
            out2d = _pallas_copy_2d(jnp.reshape(x_flat, (T // L, L)))
            return jnp.reshape(out2d, (N, K))

    # Fallback when T is not a multiple of 128: keep (N, K) directly
    # (full-extent lane dim is legal; stores are lane-masked — correct, slower).
    return _pallas_copy_2d(x_flat)


if __name__ == "__main__":
    key = jax.random.PRNGKey(0)
    x = jax.random.normal(key, (2, 4, 16, 16), jnp.float32)

    ref = jnp.reshape(x, (x.shape[0], -1))  # torch.flatten(x, 1) reference

    out = flatten(x)
    out = jax.block_until_ready(out)

    assert out.shape == (2, 4 * 16 * 16), out.shape
    assert out.dtype == x.dtype
    assert bool(jnp.all(out == ref))
    print("KERNEL_OK")
</pallas_src>

<mosaic_0001>
module attributes {stable_mosaic.version = 11 : i64} {
  func.func @_copy_kernel(%arg0: i32, %arg1: memref<2x1024xf32, #tpu.memory_space<vmem>>, %arg2: memref<2x1024xf32, #tpu.memory_space<vmem>>) attributes {dimension_semantics = [#tpu.dimension_semantics<parallel>], iteration_bounds = array<i64: 1>, scalar_prefetch = 0 : i64, scratch_operands = 0 : i64, tpu.core_type = #tpu.core_type<tc>, window_params = [{transform_indices = @transform_0, window_bounds = array<i64: 2, 1024>}, {transform_indices = @transform_1, window_bounds = array<i64: 2, 1024>}]} {
    %c0 = arith.constant 0 : index
    %c0_0 = arith.constant 0 : index
    %0 = vector.load %arg1[%c0, %c0_0] : memref<2x1024xf32, #tpu.memory_space<vmem>>, vector<2x1024xf32>
    %c0_1 = arith.constant 0 : index
    %c0_2 = arith.constant 0 : index
    %1 = vector.load %arg2[%c0_1, %c0_2] : memref<2x1024xf32, #tpu.memory_space<vmem>>, vector<2x1024xf32>
    tpu.vector_store %arg2[%c0_1, %c0_2], %0 {strides = array<i32>} : memref<2x1024xf32, #tpu.memory_space<vmem>>, vector<2x1024xf32>,
    return
  }
  func.func @transform_0(%arg0: i32) -> (i32, i32) {
    %c0_i32 = arith.constant 0 : i32
    %c0_i32_0 = arith.constant 0 : i32
    return %arg0, %c0_i32 : i32, i32
  }
  func.func @transform_1(%arg0: i32) -> (i32, i32) {
    %c0_i32 = arith.constant 0 : i32
    %c0_i32_0 = arith.constant 0 : i32
    return %arg0, %c0_i32 : i32, i32
  }
}

</mosaic_0001>

<bundles_post_ra>
// kernel: tpu_custom_call.1
= control target key start
LH: loop header
LB: loop body
LE: loop exit
PB: predicated region body
PF: predicated region fallthrough
CT: control target
= control target key end

     0   :  { %6 = vsyncpa [#allocation3], 0  ;;  %s104_s0 = inlined_call_operand.hbm [shape: f32[2,1024], index: 0, kind: input, shape index: {}, may-alias: {0,1}]   ;;  %s105_s1 = inlined_call_operand.hbm [shape: f32[2,1024], index: 1, kind: output, shape index: {}, may-alias: {0,1}]  }
   0x1   :  { %7 = vsyncpa [#allocation4], 0  ;;  %s86_s6 = smov [#allocation2]  }
   0x2   :  { %s14_s7 = sshll.u32 %s86_s6, 4  ;;  %s15_s7 = int_to_ptr.vmem [resolvable:$true] %s14_s7 }
   0x3   :  { %s50_s8 = scalar_lea.vmem %s15_s7, 256  ;;  %p55_p1 = scmp.lt.s32.totalorder %s15_s7, %s15_s7 }
   0x4   :  { %p51_p0 = scmp.ne.s32.totalorder %s15_s7, %s50_s8  ;;  %p56_p2 = scmp.lt.s32.totalorder %s50_s8, %s50_s8 }
   0x6   :  { %p57_p3 = por %p56_p2, %p55_p1 }
   0x8   :  { %p58_p4 = pnand %p57_p3, %p51_p0 }
   0xa   :  { %61 = shalt.err (!%p58_p4)
}
   0xb   :  { %17 = dma.hbm_to_vmem [thread:$0]  %s104_s0, 256, %s15_s7, [#allocation3]  }
   0xc   :  { %82 = dma.done.wait [#allocation3], 256  }
   0xd   :  { %83 = vsyncadd [#allocation3], 4294967040  ;;  %s87_s11 = smov [#allocation5]   ;;  %v21_v0 = vld [vmem:[#allocation2] sm:$0xff]  ;;  %v22_v1 = vld [vmem:[#allocation2 + $0x8] sm:$0xff] }
   0xe   :  { %s31_s12 = sshll.u32 %s87_s11, 4  ;;  %23 = vst [vmem:[#allocation5] sm:$0xff] %v21_v0  ;;  %24 = vst [vmem:[#allocation5 + $0x8] sm:$0xff] %v22_v1  ;;  %s32_s12 = int_to_ptr.vmem [resolvable:$true] %s31_s12 }
   0xf   :  { %s62_s13 = scalar_lea.vmem %s32_s12, 256  ;;  %p67_p6 = scmp.lt.s32.totalorder %s32_s12, %s32_s12 }
  0x10   :  { %p63_p5 = scmp.ne.s32.totalorder %s32_s12, %s62_s13  ;;  %p68_p7 = scmp.lt.s32.totalorder %s62_s13, %s62_s13 }
  0x12   :  { %p69_p8 = por %p68_p7, %p67_p6 }
  0x14   :  { %p70_p9 = pnand %p69_p8, %p63_p5 }
  0x16   :  { %73 = shalt.err (!%p70_p9)
}
  0x17   :  { %34 = dma.vmem_to_hbm [thread:$0]  %s32_s12, 256, %s105_s1, [#allocation4]  }
  0x18   :  { %84 = dma.done.wait [#allocation4], 256  }
  0x19   :  { %85 = vsyncadd [#allocation4], 4294967040 }
  0x1a   :  { %38 = vsyncpa [#allocation3], 1 }
  0x1b   :  { %39 = vsyncpa [#allocation4], 1 }

</bundles_post_ra>
